<compile_context>
chip_gen: v6e
topology: v6e:2x2x1
jax: 0.10.0
libtpu: 0.0.40
codegen_flags: <defaults>
</compile_context>

<pallas_src>
import math

import jax
import jax.numpy as jnp
from jax import lax
from jax.experimental import pallas as pl
from jax.experimental.pallas import tpu as pltpu


def _pos_embed_kernel(idx_ref, emb_ref, pe_ref, out_ref):
    # idx_ref: (B, S_pad) int32, scalar-prefetched into SMEM
    # emb_ref: (max_len, d_model) f32, VMEM-resident embedding table
    # pe_ref : (TS, d_model)      f32, sinusoidal rows for this seq tile
    # out_ref: (1, TS, d_model)   f32, output tile for (batch b, seq tile t)
    t = pl.program_id(0)
    b = pl.program_id(1)
    ts = out_ref.shape[1]
    base = t * ts

    def gather_row(i, carry):
        tok = idx_ref[b, base + i]
        out_ref[0, pl.ds(i, 1), :] = emb_ref[pl.ds(tok, 1), :]
        return carry

    lax.fori_loop(0, ts, gather_row, 0, unroll=8)

    # Single vectorized, lane-dense add over the whole (TS, d_model) tile.
    out_ref[0] = out_ref[0] + pe_ref[...]


def position_embedding_forward(x_idx, emb_table, pe_table, *, ts_target=256):
    """x_idx: (B, S) int indices; emb_table/pe_table: (max_len, d_model) f32."""
    B, S = x_idx.shape
    max_len, d_model = emb_table.shape
    assert pe_table.shape[1] == d_model
    assert pe_table.shape[0] >= S, "pe_table must cover the sequence length"

    # Clamp indices: nn.Embedding would raise on OOB; here an OOB index would be
    # an unchecked VMEM read, so clamp defensively.
    x_idx = jnp.clip(x_idx.astype(jnp.int32), 0, max_len - 1)

    # Sequence tile: multiple of 8 (sublane), capped at ts_target; pad S up.
    s_pad8 = ((S + 7) // 8) * 8
    ts = min(ts_target, s_pad8)
    num_t = pl.cdiv(S, ts)
    s_pad = num_t * ts
    if s_pad != S:
        x_idx = jnp.pad(x_idx, ((0, 0), (0, s_pad - S)))

    # PE rows actually needed (padded to the tiled length).
    pe_rows = pe_table[: min(pe_table.shape[0], s_pad), :].astype(jnp.float32)
    if pe_rows.shape[0] < s_pad:
        pe_rows = jnp.pad(pe_rows, ((0, s_pad - pe_rows.shape[0]), (0, 0)))
    emb_table = emb_table.astype(jnp.float32)

    # TODO(synk): tables are kept f32; storing them in bf16 (upcast in-kernel)
    # would halve input HBM traffic, biggest win on bandwidth-starved v5e.

    grid = (num_t, B)  # batch innermost -> PE tile reused (no re-DMA) across B

    grid_spec = pltpu.PrefetchScalarGridSpec(
        num_scalar_prefetch=1,
        grid=grid,
        in_specs=[
            # Full embedding table, constant block index -> VMEM-resident,
            # gathered in-kernel.
            pl.BlockSpec((max_len, d_model), lambda t, b, idx: (0, 0)),
            # Sinusoidal PE tile for this seq tile (independent of b).
            pl.BlockSpec((ts, d_model), lambda t, b, idx: (t, 0)),
        ],
        out_specs=pl.BlockSpec((1, ts, d_model), lambda t, b, idx: (b, t, 0)),
    )

    table_bytes = max_len * d_model * 4
    tile_bytes = ts * d_model * 4
    # table (possibly double-buffered) + PE/out tiles double-buffered + slack
    vmem_needed = 2 * table_bytes + 6 * tile_bytes + (2 << 20)
    # TODO(synk): for very large vocabularies the resident table will not fit
    # VMEM (esp. v7x's 64 MiB); switch to an HBM table (memory_space=pl.ANY)
    # with manually double-buffered row DMAs in that regime.
    vmem_limit = int(min(max(vmem_needed, 32 * 1024 * 1024), 100 * 1024 * 1024))

    out = pl.pallas_call(
        _pos_embed_kernel,
        out_shape=jax.ShapeDtypeStruct((B, s_pad, d_model), jnp.float32),
        grid_spec=grid_spec,
        compiler_params=pltpu.CompilerParams(
            dimension_semantics=("parallel", "parallel"),
            vmem_limit_bytes=vmem_limit,
        ),
        cost_estimate=pl.CostEstimate(
            flops=B * s_pad * d_model,
            transcendentals=0,
            bytes_accessed=(
                B * s_pad * d_model * 4      # output
                + B * s_pad * 4              # indices
                + table_bytes                # embedding table
                + s_pad * d_model * 4        # PE rows
            ),
        ),
    )(x_idx, emb_table, pe_rows)

    return out[:, :S, :]


def make_sinusoidal_pe(max_len, d_model):
    assert d_model % 2 == 0, "sinusoidal PE (like the PyTorch ref) needs even d_model"
    pos = jnp.arange(max_len, dtype=jnp.float32)[:, None]
    div = jnp.exp(
        jnp.arange(0, d_model, 2, dtype=jnp.float32) * (-(math.log(10000.0) / d_model))
    )
    pe = jnp.zeros((max_len, d_model), dtype=jnp.float32)
    pe = pe.at[:, 0::2].set(jnp.sin(pos * div))
    pe = pe.at[:, 1::2].set(jnp.cos(pos * div))
    return pe


if __name__ == "__main__":
    d_model = 32
    max_len = 64

    key = jax.random.PRNGKey(0)
    k_emb, k_idx1, k_idx2 = jax.random.split(key, 3)

    # nn.Embedding default init: weight ~ N(0, 1)
    emb_table = jax.random.normal(k_emb, (max_len, d_model), dtype=jnp.float32)
    pe_table = make_sinusoidal_pe(max_len, d_model)

    # Case 1: small canonical shape (batch=2, seq=8).
    batch, seq = 2, 8
    x1 = jax.random.randint(k_idx1, (batch, seq), 0, max_len, dtype=jnp.int32)
    out1 = jax.block_until_ready(position_embedding_forward(x1, emb_table, pe_table))
    ref1 = emb_table[x1] + pe_table[None, :seq, :]
    assert out1.shape == (batch, seq, d_model)
    assert jnp.allclose(out1, ref1, atol=1e-6), "case 1 mismatch vs reference"

    # Case 2: non-multiple-of-8 sequence length with multiple seq tiles
    # (exercises padding and PE-tile reuse across the batch).
    batch2, seq2 = 3, 20
    x2 = jax.random.randint(k_idx2, (batch2, seq2), 0, max_len, dtype=jnp.int32)
    out2 = jax.block_until_ready(
        position_embedding_forward(x2, emb_table, pe_table, ts_target=8)
    )
    ref2 = emb_table[x2] + pe_table[None, :seq2, :]
    assert out2.shape == (batch2, seq2, d_model)
    assert jnp.allclose(out2, ref2, atol=1e-6), "case 2 mismatch vs reference"

    print("KERNEL_OK")
</pallas_src>

<mosaic_0001>
module attributes {stable_mosaic.version = 11 : i64} {
  func.func @_pos_embed_kernel(%arg0: i32, %arg1: i32, %arg2: memref<2x8xi32, #tpu.memory_space<smem>>, %arg3: memref<64x32xf32, #tpu.memory_space<vmem>>, %arg4: memref<8x32xf32, #tpu.memory_space<vmem>>, %arg5: memref<1x8x32xf32, #tpu.memory_space<vmem>>) attributes {dimension_semantics = [#tpu.dimension_semantics<parallel>, #tpu.dimension_semantics<parallel>], iteration_bounds = array<i64: 1, 2>, scalar_prefetch = 1 : i64, scratch_operands = 0 : i64, tpu.core_type = #tpu.core_type<tc>, window_params = [{pipeline_mode = #tpu.pipeline_mode<synchronous>, transform_indices = @transform_0, window_bounds = array<i64: 64, 32>}, {transform_indices = @transform_1, window_bounds = array<i64: 8, 32>}, {transform_indices = @transform_2, window_bounds = array<i64: 1, 8, 32>}]} {
    %c8_i32 = arith.constant 8 : i32
    %0 = arith.muli %arg0, %c8_i32 : i32
    %c0_i32 = arith.constant 0 : i32
    %1 = arith.addi %0, %c0_i32 : i32
    %2 = arith.index_cast %arg1 : i32 to index
    %3 = arith.index_cast %1 : i32 to index
    %4 = memref.load %arg2[%2, %3] : memref<2x8xi32, #tpu.memory_space<smem>>
    %5 = arith.index_cast %4 : i32 to index
    %c0 = arith.constant 0 : index
    %6 = vector.load %arg3[%5, %c0] : memref<64x32xf32, #tpu.memory_space<vmem>>, vector<1x32xf32>
    %c0_0 = arith.constant 0 : index
    %7 = arith.index_cast %c0_i32 : i32 to index
    %c0_1 = arith.constant 0 : index
    %8 = vector.load %arg5[%c0_0, %7, %c0_1] : memref<1x8x32xf32, #tpu.memory_space<vmem>>, vector<1x1x32xf32>
    %9 = vector.shape_cast %8 : vector<1x1x32xf32> to vector<1x32xf32>
    %10 = vector.shape_cast %6 : vector<1x32xf32> to vector<1x1x32xf32>
    tpu.vector_store %arg5[%c0_0, %7, %c0_1], %10 {strides = array<i32>} : memref<1x8x32xf32, #tpu.memory_space<vmem>>, vector<1x1x32xf32>,
    %c1_i32 = arith.constant 1 : i32
    %11 = arith.addi %0, %c1_i32 : i32
    %12 = arith.index_cast %arg1 : i32 to index
    %13 = arith.index_cast %11 : i32 to index
    %14 = memref.load %arg2[%12, %13] : memref<2x8xi32, #tpu.memory_space<smem>>
    %15 = arith.index_cast %14 : i32 to index
    %c0_2 = arith.constant 0 : index
    %16 = vector.load %arg3[%15, %c0_2] : memref<64x32xf32, #tpu.memory_space<vmem>>, vector<1x32xf32>
    %c0_3 = arith.constant 0 : index
    %17 = arith.index_cast %c1_i32 : i32 to index
    %c0_4 = arith.constant 0 : index
    %18 = vector.load %arg5[%c0_3, %17, %c0_4] : memref<1x8x32xf32, #tpu.memory_space<vmem>>, vector<1x1x32xf32>
    %19 = vector.shape_cast %18 : vector<1x1x32xf32> to vector<1x32xf32>
    %20 = vector.shape_cast %16 : vector<1x32xf32> to vector<1x1x32xf32>
    tpu.vector_store %arg5[%c0_3, %17, %c0_4], %20 {strides = array<i32>} : memref<1x8x32xf32, #tpu.memory_space<vmem>>, vector<1x1x32xf32>,
    %c2_i32 = arith.constant 2 : i32
    %21 = arith.addi %0, %c2_i32 : i32
    %22 = arith.index_cast %arg1 : i32 to index
    %23 = arith.index_cast %21 : i32 to index
    %24 = memref.load %arg2[%22, %23] : memref<2x8xi32, #tpu.memory_space<smem>>
    %25 = arith.index_cast %24 : i32 to index
    %c0_5 = arith.constant 0 : index
    %26 = vector.load %arg3[%25, %c0_5] : memref<64x32xf32, #tpu.memory_space<vmem>>, vector<1x32xf32>
    %c0_6 = arith.constant 0 : index
    %27 = arith.index_cast %c2_i32 : i32 to index
    %c0_7 = arith.constant 0 : index
    %28 = vector.load %arg5[%c0_6, %27, %c0_7] : memref<1x8x32xf32, #tpu.memory_space<vmem>>, vector<1x1x32xf32>
    %29 = vector.shape_cast %28 : vector<1x1x32xf32> to vector<1x32xf32>
    %30 = vector.shape_cast %26 : vector<1x32xf32> to vector<1x1x32xf32>
    tpu.vector_store %arg5[%c0_6, %27, %c0_7], %30 {strides = array<i32>} : memref<1x8x32xf32, #tpu.memory_space<vmem>>, vector<1x1x32xf32>,
    %c3_i32 = arith.constant 3 : i32
    %31 = arith.addi %0, %c3_i32 : i32
    %32 = arith.index_cast %arg1 : i32 to index
    %33 = arith.index_cast %31 : i32 to index
    %34 = memref.load %arg2[%32, %33] : memref<2x8xi32, #tpu.memory_space<smem>>
    %35 = arith.index_cast %34 : i32 to index
    %c0_8 = arith.constant 0 : index
    %36 = vector.load %arg3[%35, %c0_8] : memref<64x32xf32, #tpu.memory_space<vmem>>, vector<1x32xf32>
    %c0_9 = arith.constant 0 : index
    %37 = arith.index_cast %c3_i32 : i32 to index
    %c0_10 = arith.constant 0 : index
    %38 = vector.load %arg5[%c0_9, %37, %c0_10] : memref<1x8x32xf32, #tpu.memory_space<vmem>>, vector<1x1x32xf32>
    %39 = vector.shape_cast %38 : vector<1x1x32xf32> to vector<1x32xf32>
    %40 = vector.shape_cast %36 : vector<1x32xf32> to vector<1x1x32xf32>
    tpu.vector_store %arg5[%c0_9, %37, %c0_10], %40 {strides = array<i32>} : memref<1x8x32xf32, #tpu.memory_space<vmem>>, vector<1x1x32xf32>,
    %c4_i32 = arith.constant 4 : i32
    %41 = arith.addi %0, %c4_i32 : i32
    %42 = arith.index_cast %arg1 : i32 to index
    %43 = arith.index_cast %41 : i32 to index
    %44 = memref.load %arg2[%42, %43] : memref<2x8xi32, #tpu.memory_space<smem>>
    %45 = arith.index_cast %44 : i32 to index
    %c0_11 = arith.constant 0 : index
    %46 = vector.load %arg3[%45, %c0_11] : memref<64x32xf32, #tpu.memory_space<vmem>>, vector<1x32xf32>
    %c0_12 = arith.constant 0 : index
    %47 = arith.index_cast %c4_i32 : i32 to index
    %c0_13 = arith.constant 0 : index
    %48 = vector.load %arg5[%c0_12, %47, %c0_13] : memref<1x8x32xf32, #tpu.memory_space<vmem>>, vector<1x1x32xf32>
    %49 = vector.shape_cast %48 : vector<1x1x32xf32> to vector<1x32xf32>
    %50 = vector.shape_cast %46 : vector<1x32xf32> to vector<1x1x32xf32>
    tpu.vector_store %arg5[%c0_12, %47, %c0_13], %50 {strides = array<i32>} : memref<1x8x32xf32, #tpu.memory_space<vmem>>, vector<1x1x32xf32>,
    %c5_i32 = arith.constant 5 : i32
    %51 = arith.addi %0, %c5_i32 : i32
    %52 = arith.index_cast %arg1 : i32 to index
    %53 = arith.index_cast %51 : i32 to index
    %54 = memref.load %arg2[%52, %53] : memref<2x8xi32, #tpu.memory_space<smem>>
    %55 = arith.index_cast %54 : i32 to index
    %c0_14 = arith.constant 0 : index
    %56 = vector.load %arg3[%55, %c0_14] : memref<64x32xf32, #tpu.memory_space<vmem>>, vector<1x32xf32>
    %c0_15 = arith.constant 0 : index
    %57 = arith.index_cast %c5_i32 : i32 to index
    %c0_16 = arith.constant 0 : index
    %58 = vector.load %arg5[%c0_15, %57, %c0_16] : memref<1x8x32xf32, #tpu.memory_space<vmem>>, vector<1x1x32xf32>
    %59 = vector.shape_cast %58 : vector<1x1x32xf32> to vector<1x32xf32>
    %60 = vector.shape_cast %56 : vector<1x32xf32> to vector<1x1x32xf32>
    tpu.vector_store %arg5[%c0_15, %57, %c0_16], %60 {strides = array<i32>} : memref<1x8x32xf32, #tpu.memory_space<vmem>>, vector<1x1x32xf32>,
    %c6_i32 = arith.constant 6 : i32
    %61 = arith.addi %0, %c6_i32 : i32
    %62 = arith.index_cast %arg1 : i32 to index
    %63 = arith.index_cast %61 : i32 to index
    %64 = memref.load %arg2[%62, %63] : memref<2x8xi32, #tpu.memory_space<smem>>
    %65 = arith.index_cast %64 : i32 to index
    %c0_17 = arith.constant 0 : index
    %66 = vector.load %arg3[%65, %c0_17] : memref<64x32xf32, #tpu.memory_space<vmem>>, vector<1x32xf32>
    %c0_18 = arith.constant 0 : index
    %67 = arith.index_cast %c6_i32 : i32 to index
    %c0_19 = arith.constant 0 : index
    %68 = vector.load %arg5[%c0_18, %67, %c0_19] : memref<1x8x32xf32, #tpu.memory_space<vmem>>, vector<1x1x32xf32>
    %69 = vector.shape_cast %68 : vector<1x1x32xf32> to vector<1x32xf32>
    %70 = vector.shape_cast %66 : vector<1x32xf32> to vector<1x1x32xf32>
    tpu.vector_store %arg5[%c0_18, %67, %c0_19], %70 {strides = array<i32>} : memref<1x8x32xf32, #tpu.memory_space<vmem>>, vector<1x1x32xf32>,
    %c7_i32 = arith.constant 7 : i32
    %71 = arith.addi %0, %c7_i32 : i32
    %72 = arith.index_cast %arg1 : i32 to index
    %73 = arith.index_cast %71 : i32 to index
    %74 = memref.load %arg2[%72, %73] : memref<2x8xi32, #tpu.memory_space<smem>>
    %75 = arith.index_cast %74 : i32 to index
    %c0_20 = arith.constant 0 : index
    %76 = vector.load %arg3[%75, %c0_20] : memref<64x32xf32, #tpu.memory_space<vmem>>, vector<1x32xf32>
    %c0_21 = arith.constant 0 : index
    %77 = arith.index_cast %c7_i32 : i32 to index
    %c0_22 = arith.constant 0 : index
    %78 = vector.load %arg5[%c0_21, %77, %c0_22] : memref<1x8x32xf32, #tpu.memory_space<vmem>>, vector<1x1x32xf32>
    %79 = vector.shape_cast %78 : vector<1x1x32xf32> to vector<1x32xf32>
    %80 = vector.shape_cast %76 : vector<1x32xf32> to vector<1x1x32xf32>
    tpu.vector_store %arg5[%c0_21, %77, %c0_22], %80 {strides = array<i32>} : memref<1x8x32xf32, #tpu.memory_space<vmem>>, vector<1x1x32xf32>,
    %c8_i32_23 = arith.constant 8 : i32
    %c0_24 = arith.constant 0 : index
    %c0_25 = arith.constant 0 : index
    %c0_26 = arith.constant 0 : index
    %81 = vector.load %arg5[%c0_24, %c0_25, %c0_26] : memref<1x8x32xf32, #tpu.memory_space<vmem>>, vector<1x8x32xf32>
    %82 = vector.shape_cast %81 : vector<1x8x32xf32> to vector<8x32xf32>
    %c0_27 = arith.constant 0 : index
    %c0_28 = arith.constant 0 : index
    %83 = vector.load %arg4[%c0_27, %c0_28] : memref<8x32xf32, #tpu.memory_space<vmem>>, vector<8x32xf32>
    %84 = arith.addf %82, %83 : vector<8x32xf32>
    %c0_29 = arith.constant 0 : index
    %c0_30 = arith.constant 0 : index
    %c0_31 = arith.constant 0 : index
    %85 = vector.load %arg5[%c0_29, %c0_30, %c0_31] : memref<1x8x32xf32, #tpu.memory_space<vmem>>, vector<1x8x32xf32>
    %86 = vector.shape_cast %85 : vector<1x8x32xf32> to vector<8x32xf32>
    %87 = vector.shape_cast %84 : vector<8x32xf32> to vector<1x8x32xf32>
    tpu.vector_store %arg5[%c0_29, %c0_30, %c0_31], %87 {strides = array<i32>} : memref<1x8x32xf32, #tpu.memory_space<vmem>>, vector<1x8x32xf32>,
    return
  }
  func.func @transform_0(%arg0: i32, %arg1: i32, %arg2: memref<2x8xi32, #tpu.memory_space<smem>>) -> (i32, i32) {
    %c0_i32 = arith.constant 0 : i32
    %c0_i32_0 = arith.constant 0 : i32
    %c0_i32_1 = arith.constant 0 : i32
    return %c0_i32, %c0_i32_0 : i32, i32
  }
  func.func @transform_1(%arg0: i32, %arg1: i32, %arg2: memref<2x8xi32, #tpu.memory_space<smem>>) -> (i32, i32) {
    %c0_i32 = arith.constant 0 : i32
    %c0_i32_0 = arith.constant 0 : i32
    return %arg0, %c0_i32 : i32, i32
  }
  func.func @transform_2(%arg0: i32, %arg1: i32, %arg2: memref<2x8xi32, #tpu.memory_space<smem>>) -> (i32, i32, i32) {
    %c0_i32 = arith.constant 0 : i32
    %c0_i32_0 = arith.constant 0 : i32
    return %arg1, %arg0, %c0_i32 : i32, i32, i32
  }
}

</mosaic_0001>

<bundles_post_ra>
// kernel: tpu_custom_call.1
= control target key start
LH: loop header
LB: loop body
LE: loop exit
PB: predicated region body
PF: predicated region fallthrough
CT: control target
= control target key end

     0   :  { %s701_s0 = inlined_call_operand.vmem [shape: s32[2,8], index: 0, kind: input, shape index: {}]   ;;  %s702_s1 = inlined_call_operand.vmem [shape: f32[64,32], index: 1, kind: input, shape index: {}]   ;;  %s703_s2 = inlined_call_operand.vmem [shape: f32[8,32], index: 2, kind: input, shape index: {}]   ;;  %s704_s3 = inlined_call_operand.hbm [shape: f32[2,8,32], index: 3, kind: output, shape index: {}]  }
   0x1   :  { %s8_s14 = sshll.u32 %s701_s0, 4  ;;  %s9_s14 = int_to_ptr.vmem [resolvable:$true] %s8_s14 }
   0x2   :  { %s430_s15 = scalar_lea.vmem %s9_s14, 32  ;;  %p435_p1 = scmp.lt.s32.totalorder %s9_s14, %s9_s14 }
   0x3   :  { %p431_p0 = scmp.ne.s32.totalorder %s9_s14, %s430_s15  ;;  %p436_p2 = scmp.lt.s32.totalorder %s430_s15, %s430_s15 }
   0x5   :  { %p437_p3 = por %p436_p2, %p435_p1 }
   0x7   :  { %p438_p4 = pnand %p437_p3, %p431_p0 }
   0x9   :  { %441 = shalt.err (!%p438_p4)  }
   0xa   :  { %s522_s16 = smov [#allocation3]  }
   0xb   :  { %11 = dma.vmem_to_smem %s9_s14, 32, %s522_s16, [#allocation2] }
   0xc   :  { %492 = dma.done.wait [#allocation2], 32 }
   0xd   :  { %493 = vsyncadd [#allocation2], 4294967264 }
   0xe   :  { %13 = sfence }
   0xf   :  { %14 = vsyncpa [#allocation5], 0 }
  0x10   :  { %16 = vsyncpa [#allocation5 + $0x1], 0  ;;  %s547_s17 = smov 0   ;;  %s549_s18 = smov 0  }
  0x11   :  { %s551_s0 = smov 0   ;;  %s553_s19 = smov 0  }
  0x12   :  { %s555_s20 = smov 0   ;;  %s557_s21 = smov 0  }
  0x13 LB: > { %s356_s22 = sadd.s32 4294967295, %s520_s21   ;;  %s357_s23 = sadd.s32 4294967294, %s520_s21   ;;  %s520_s21 = sphi %s557_s21, %s22_s21   ;;  %s516_s20 = sphi %s555_s20, %s716_s20   ;;  %s512_s19 = sphi %s553_s19, %s715_s19   ;;  %s508_s0 = sphi %s551_s0, %s714_s0   ;;  %s504_s18 = sphi %s549_s18, %s713_s18   ;;  %s500_s17 = sphi %s547_s17, %s712_s17  }
  0x14   : > { %s31_s24 = sadd.s32 1, %s516_s20  ;;  %s90_s25 = sadd.s32 1, %s508_s0 }
  0x15   : > { %p32_p5 = scmp.ge.s32.totalorder %s31_s24, 2  ;;  %p100_p6 = scmp.ne.s32.totalorder %s508_s0, %s504_s18 }
  0x16   : > { %p101_p7 = scmp.eq.s32.totalorder %s356_s22, 1  ;;  %p106_p8 = scmp.ne.s32.totalorder %s504_s18, %s500_s17 }
  0x17   : > { %s718_s24 = smov (%p32_p5, %s31_s24), 0  ;;  %p107_p10 = scmp.eq.s32.totalorder %s357_s23, 1 }
  0x18   : > { %707 = sst [smem:[#allocation8_spill]] %s718_s24  ;;  %p585_p9 = por %p101_p7, %p100_p6 }
  0x19   : > { %s85_s27 = ssub.s32 %s516_s20, %s718_s24  ;;  %p360_p11 = scmp.ge.s32.totalorder %s520_s21, 1 }
  0x1a   : > { %p88_p12 = scmp.eq.s32.totalorder %s85_s27, 0  ;;  %p592_p13 = por %p107_p10, %p106_p8 }
  0x1b   : > { %p135_p0 = scmp.lt.s32.totalorder %s520_s21, 3 }
  0x1c   : > { %s598_s29 = scalar_select %p88_p12, %s508_s0, %s90_s25  }
  0x1d   : > { %p136_p1 = pnand %p360_p11, %p135_p0 }
  0x1e   : > { %s705_s30 = sand.u32 (!%p136_p1), 1, %s504_s18   ;;  %s601_s4 = sshll.u32 (!%p136_p1), %s512_s19, 7 }
  0x1f   : > { %139 = sbr.rel (%p136_p1) target bundleno = 72 (0x48), region = 28  ;;  %s361_s5 = sshll.u32 (!%p136_p1), %s705_s30, 3 }
  0x20   : > { %s168_s6 = sld [smem:[#allocation3 + %s601_s4]] (!%p136_p1)  ;;  %s180_s7 = sadd.s32 (!%p136_p1), 1, %s601_s4 }
  0x21   : > { %s181_s8 = sld [smem:[#allocation3 + %s180_s7]] (!%p136_p1)  ;;  %s192_s9 = sadd.s32 (!%p136_p1), 2, %s601_s4 }
  0x22   : > { %s193_s10 = sld [smem:[#allocation3 + %s192_s9]] (!%p136_p1)  ;;  %s204_s11 = sadd.s32 (!%p136_p1), 3, %s601_s4 }
  0x23   : > { %s205_s12 = sld [smem:[#allocation3 + %s204_s11]] (!%p136_p1)  ;;  %s216_s13 = sadd.s32 (!%p136_p1), 4, %s601_s4 }
  0x24   : > { %vm171_vm0 = vcmask 253952   ;;  %s217_s14 = sld [smem:[#allocation3 + %s216_s13]]  ;;  %s228_s15 = sadd.s32 5, %s601_s4  ;;  %v258_v8 = vld [vmem:[%s703_s2] sm:$0xff]  ;;  %vm260_vm1 = vcmask 261120  }
  0x25   : > { %s229_s23 = sld [smem:[#allocation3 + %s228_s15]]  ;;  %s240_s25 = sadd.s32 6, %s601_s4 }
  0x26   : > { %s169_s22 = scalar_lea.vmem %s702_s1, %s168_s6  ;;  %s252_s27 = sadd.s32 7, %s601_s4 }
  0x27   : > { %v170_v0 = vld [vmem:[%s169_s22] sm:$0x1]  ;;  %s616_s30 = scalar_lea.vmem [#allocation4], %s361_s5  ;;  %s182_s11 = scalar_lea.vmem %s702_s1, %s181_s8 }
  0x28   : > { %172 = vst.msk [vmem:[%s616_s30] sm:$0x1] %vm171_vm0, %v170_v0  ;;  %s241_s13 = sld [smem:[#allocation3 + %s240_s25]]  ;;  %v183_v1 = vld [vmem:[%s182_s11] sm:$0x1]  ;;  %s194_s16 = scalar_lea.vmem %s702_s1, %s193_s10 }
  0x29   : > { %s253_s5 = sld [smem:[#allocation3 + %s252_s27]]  ;;  %184 = vst.msk [vmem:[%s616_s30 + $0x1] sm:$0x1] %vm171_vm0, %v183_v1  ;;  %v195_v2 = vld [vmem:[%s194_s16] sm:$0x1]  ;;  %s206_s24 = scalar_lea.vmem %s702_s1, %s205_s12 }
  0x2a   : > { %196 = vst.msk [vmem:[%s616_s30 + $0x2] sm:$0x1] %vm171_vm0, %v195_v2  ;;  %v207_v3 = vld [vmem:[%s206_s24] sm:$0x1]  ;;  %s218_s7 = scalar_lea.vmem %s702_s1, %s217_s14  ;;  %s277_s19 = sshll.u32 %s616_s30, 4  ;;  %s278_s19 = int_to_ptr.vmem [resolvable:$true] %s277_s19 }
  0x2b   : > { %208 = vst.msk [vmem:[%s616_s30 + $0x3] sm:$0x1] %vm171_vm0, %v207_v3  ;;  %v219_v4 = vld [vmem:[%s218_s7] sm:$0x1]  ;;  %s230_s9 = scalar_lea.vmem %s702_s1, %s229_s23  ;;  %s275_s8 = scalar_lea.hbm %s704_s3, %s601_s4 }
  0x2c   : > { %220 = vst.msk [vmem:[%s616_s30 + $0x4] sm:$0x1] %vm171_vm0, %v219_v4  ;;  %v231_v5 = vld [vmem:[%s230_s9] sm:$0x1]  ;;  %s442_s7 = scalar_lea.vmem %s278_s19, 128  ;;  %s523_s10 = smov [#allocation4]  }
  0x2d   : > { %232 = vst.msk [vmem:[%s616_s30 + $0x5] sm:$0x1] %vm171_vm0, %v231_v5  ;;  %p443_p2 = scmp.ne.s32.totalorder %s278_s19, %s442_s7  ;;  %s446_s27 = sshll.u32 %s523_s10, 4  ;;  %s447_s27 = int_to_ptr.vmem [resolvable:$false] %s446_s27 }
  0x2e   : > { %s242_s11 = scalar_lea.vmem %s702_s1, %s241_s13  ;;  %s448_s9 = scalar_lea.vmem %s447_s27, 256 }
  0x2f   : > { %v243_v6 = vld [vmem:[%s242_s11] sm:$0x1]  ;;  %s254_s15 = scalar_lea.vmem %s702_s1, %s253_s5  ;;  %s710_s5 = sand.u32 1, %s504_s18  }
  0x30   : > { %244 = vst.msk [vmem:[%s616_s30 + $0x6] sm:$0x1] %vm171_vm0, %v243_v6  ;;  %v255_v7 = vld [vmem:[%s254_s15] sm:$0x1]  ;;  %s263_s25 = scalar_lea.sflag [#allocation5], %s710_s5  ;;  %p444_p3 = pnand %p443_p2, %p585_p9 }
  0x31   : > { %256 = vst.msk [vmem:[%s616_s30 + $0x7] sm:$0x1] %vm171_vm0, %v255_v7  ;;  %p449_p5 = scmp.lt.s32.totalorder %s278_s19, %s447_s27  ;;  %p450_p6 = scmp.lt.s32.totalorder %s448_s9, %s442_s7 }
  0x32   : > { %p445_p4 = pneg %p444_p3 }
  0x33   : > { %p451_p7 = por %p450_p6, %p449_p5 }
  0x35   : > { %p452_p8 = pnand %p451_p7, %p445_p4 }
  0x38   : > { %v257_v9 = vld [vmem:[%s616_s30] sm:$0xff] }
  0x39   : > { %v259_v10 = vadd.f32 %v258_v8, %v257_v9 }
  0x3b   : > { %261 = vst.msk [vmem:[%s616_s30] sm:$0xff] %vm260_vm1, %v259_v10 }
  0x3c   : > { %455 = shalt.err (!%p452_p8)
}
  0x3d   : > { %s456_s24 = scalar_lea.hbm %s275_s8, 128  ;;  %s460_s12 = scalar_lea.hbm %s704_s3, 256 }
  0x3e   : > { %p457_p10 = scmp.ne.s32.totalorder %s275_s8, %s456_s24  ;;  %p461_p0 = scmp.lt.s32.totalorder %s275_s8, %s704_s3 }
  0x3f   : > { %p462_p1 = scmp.lt.s32.totalorder %s460_s12, %s456_s24 }
  0x40   : > { %p458_p11 = pnand %p457_p10, %p585_p9 }
  0x41   : > { %p463_p2 = por %p462_p1, %p461_p0 }
  0x42   : > { %p459_p12 = pneg %p458_p11 }
  0x44   : > { %p464_p3 = pnand %p463_p2, %p459_p12 }
  0x46   : > { %467 = shalt.err (!%p464_p3)
}
  0x47   : > { %374 = dma.vmem_to_hbm [thread:$0]  (%p585_p9), %s278_s19, 128, %s275_s8, %s263_s25  }
  0x48 PF: > { %p380_p4 = scmp.ge.s32.totalorder %s520_s21, 2  ;;  %s289_s6 = sand.u32 1, %s500_s17  }
  0x49   : > { %s290_s15 = scalar_lea.sflag [#allocation5], %s289_s6 }
  0x4a   : > { %p377_p5 = pnand %p380_p4, %p592_p13 }
  0x4c   : > { %p378_p6 = pneg %p377_p5 }
  0x4e   : > { %495 = dma.done.wait (%p378_p6), %s290_s15, 128  }
  0x4f   : > { %497 = vsyncadd (%p378_p6), %s290_s15, 4294967168  ;;  %s22_s21 = sadd.s32 1, %s520_s21   ;;  %s711_s26 = sld [smem:[#allocation8_spill]] }
  0x50   : > { %p19_p7 = scmp.ge.s32.totalorder %s22_s21, 4   ;;  %s712_s17 = smov %s504_s18 }
  0x51   : > { %s713_s18 = smov %s508_s0  ;;  %s714_s0 = smov %s598_s29 }
  0x52   : > { %s715_s19 = smov %s516_s20  ;;  %21 = sbr.rel (!%p19_p7) target bundleno = 19 (0x13), region = 71 }
  0x55   : > { %s716_s20 = smov %s711_s26 }
  0x57   :  { %295 = vsyncpa [#allocation5], 1 }
  0x58   :  { %297 = vsyncpa [#allocation5 + $0x1], 1 }

</bundles_post_ra>
